<compile_context>
chip_gen: v7x
topology: tpu7x:2x2x1
jax: 0.10.0
libtpu: 0.0.40
codegen_flags: <defaults>
</compile_context>

<pallas_src>
import functools
import math

import jax
import jax.numpy as jnp
from jax.experimental import pallas as pl
from jax.experimental.pallas import tpu as pltpu

EPS = 1e-5


# --------------------------------------------------------------------------
# helpers
# --------------------------------------------------------------------------

def _round_up(x, m):
    return ((x + m - 1) // m) * m


def _tpu_vmem_capacity():
    try:
        return int(pltpu.get_tpu_info().vmem_capacity_bytes)
    except Exception:
        return 64 * 1024 * 1024   # conservative (v7x physical VMEM)


def _vmem_limit_bytes():
    # explicit scoped-VMEM limit: half of physical, capped for safety
    return min(_tpu_vmem_capacity() // 2, 100 * 1024 * 1024)


def _pick_tile(dim, cap, align):
    """Largest tile <= cap that divides dim and is `align`-aligned (or full dim)."""
    if dim <= cap:
        return dim
    t = (cap // align) * align
    while t >= align:
        if dim % t == 0:
            return t
        t -= align
    return dim


def _ln_block_rows(rows, ndim, itemsize=4):
    """VMEM-budgeted row tile (multiple of 8), generation-aware via get_tpu_info."""
    budget = _vmem_limit_bytes() // 2                       # headroom
    per_row = ndim * itemsize * 2 * 2                       # in + out, double-buffered
    br = max(8, min(budget // max(per_row, 1), 4096))
    br = (br // 8) * 8
    rows8 = _round_up(rows, 8)
    br = min(br, rows8)
    # keep >=2 grid steps for large inputs so both v7x TensorCores get work
    if rows8 >= 1024 and rows8 // br < 2:
        br = _round_up(-(-rows8 // 2), 8)
    return max(br, 8)


# --------------------------------------------------------------------------
# LayerNorm kernel  (fused single-pass sum / sum-of-squares reduction)
# --------------------------------------------------------------------------

def _layernorm_bias_kernel(x_ref, w_ref, b_ref, o_ref):
    x = x_ref[...].astype(jnp.float32)
    n = x.shape[-1]
    s = jnp.sum(x, axis=-1, keepdims=True)
    sq = jnp.sum(x * x, axis=-1, keepdims=True)
    mean = s / n
    var = sq / n - mean * mean                     # one XLU pass instead of two
    inv = jax.lax.rsqrt(var + EPS)
    y = (x - mean) * inv
    y = y * w_ref[...].astype(jnp.float32) + b_ref[...].astype(jnp.float32)
    o_ref[...] = y.astype(o_ref.dtype)


def _layernorm_nobias_kernel(x_ref, w_ref, o_ref):
    x = x_ref[...].astype(jnp.float32)
    n = x.shape[-1]
    s = jnp.sum(x, axis=-1, keepdims=True)
    sq = jnp.sum(x * x, axis=-1, keepdims=True)
    mean = s / n
    var = sq / n - mean * mean
    inv = jax.lax.rsqrt(var + EPS)
    y = (x - mean) * inv * w_ref[...].astype(jnp.float32)
    o_ref[...] = y.astype(o_ref.dtype)


def layer_norm(x, weight, bias=None):
    ndim = weight.shape[-1]
    orig_shape = x.shape
    rows = math.prod(orig_shape[:-1])
    x2 = x.reshape(rows, ndim)

    br = _ln_block_rows(rows, ndim)
    rows_p = _round_up(rows, br)
    if rows_p != rows:
        x2 = jnp.pad(x2, ((0, rows_p - rows), (0, 0)))

    args = [x2, weight.reshape(1, ndim)]
    in_specs = [
        pl.BlockSpec((br, ndim), lambda i: (i, 0)),
        pl.BlockSpec((1, ndim), lambda i: (0, 0)),
    ]
    if bias is not None:
        args.append(bias.reshape(1, ndim))
        in_specs.append(pl.BlockSpec((1, ndim), lambda i: (0, 0)))
        kernel = _layernorm_bias_kernel
    else:
        kernel = _layernorm_nobias_kernel   # no zeros allocation / DMA when bias absent

    out = pl.pallas_call(
        kernel,
        out_shape=jax.ShapeDtypeStruct((rows_p, ndim), x.dtype),
        grid=(rows_p // br,),
        in_specs=in_specs,
        out_specs=pl.BlockSpec((br, ndim), lambda i: (i, 0)),
        compiler_params=pltpu.CompilerParams(
            dimension_semantics=("parallel",),
            vmem_limit_bytes=_vmem_limit_bytes(),
        ),
    )(*args)

    if rows_p != rows:
        out = out[:rows]
    return out.reshape(orig_shape)


# --------------------------------------------------------------------------
# Matmul kernel (fused bias + optional GELU epilogue)
# --------------------------------------------------------------------------

def _matmul_kernel(*refs, activation, has_bias):
    if has_bias:
        x_ref, w_ref, b_ref, o_ref, acc_ref = refs
    else:
        x_ref, w_ref, o_ref, acc_ref = refs
        b_ref = None

    @pl.when(pl.program_id(2) == 0)
    def _():
        acc_ref[...] = jnp.zeros_like(acc_ref)

    acc_ref[...] += jnp.dot(x_ref[...], w_ref[...],
                            preferred_element_type=jnp.float32)

    @pl.when(pl.program_id(2) == pl.num_programs(2) - 1)
    def _():
        acc = acc_ref[...]
        if b_ref is not None:
            acc = acc + b_ref[...].astype(jnp.float32)
        if activation == "gelu":
            # TODO(synk): torch nn.GELU() is erf-exact; tanh approximation used
            # in-kernel (difference ~1e-3), as erf lowering support varies.
            acc = jax.nn.gelu(acc, approximate=True)
        o_ref[...] = acc.astype(o_ref.dtype)


def linear(x2, w, b=None, activation=None):
    """x2: (M, K), w: (K, N), b: (N,) or None -> (M, N)."""
    M, K = x2.shape
    K2, N = w.shape
    assert K == K2

    Mp = _round_up(M, 8)
    if Mp != M:
        x2 = jnp.pad(x2, ((0, Mp - M), (0, 0)))

    tm = _pick_tile(Mp, 256, 8)
    tn = _pick_tile(N, 256, 128)
    tk = _pick_tile(K, 512, 128)
    grid = (Mp // tm, N // tn, K // tk)

    args = [x2, w]
    in_specs = [
        pl.BlockSpec((tm, tk), lambda i, j, k: (i, k)),
        pl.BlockSpec((tk, tn), lambda i, j, k: (k, j)),
    ]
    if b is not None:
        args.append(b.reshape(1, N))
        in_specs.append(pl.BlockSpec((1, tn), lambda i, j, k: (0, j)))

    kernel = functools.partial(_matmul_kernel, activation=activation,
                               has_bias=b is not None)

    out = pl.pallas_call(
        kernel,
        out_shape=jax.ShapeDtypeStruct((Mp, N), x2.dtype),
        grid=grid,
        in_specs=in_specs,
        out_specs=pl.BlockSpec((tm, tn), lambda i, j, k: (i, j)),
        scratch_shapes=[pltpu.VMEM((tm, tn), jnp.float32)],
        compiler_params=pltpu.CompilerParams(
            dimension_semantics=("parallel", "parallel", "arbitrary"),
            vmem_limit_bytes=_vmem_limit_bytes(),
        ),
    )(*args)

    if Mp != M:
        out = out[:M]
    return out


# --------------------------------------------------------------------------
# Causal self-attention kernel (one (batch*head) slice per grid step)
# --------------------------------------------------------------------------

def _attention_kernel(q_ref, k_ref, v_ref, o_ref, *, scale):
    q = q_ref[...].astype(jnp.float32)          # (T, hd)
    k = k_ref[...].astype(jnp.float32)
    v = v_ref[...].astype(jnp.float32)

    s = jax.lax.dot_general(q, k, (((1,), (1,)), ((), ())),
                            preferred_element_type=jnp.float32) * scale  # (T, T)
    T = s.shape[0]
    row = jax.lax.broadcasted_iota(jnp.int32, (T, T), 0)
    col = jax.lax.broadcasted_iota(jnp.int32, (T, T), 1)
    s = jnp.where(col <= row, s, jnp.float32(-1e30))

    m = jnp.max(s, axis=-1, keepdims=True)
    p = jnp.exp(s - m)
    l = jnp.sum(p, axis=-1, keepdims=True)
    p = p / l
    y = jnp.dot(p, v, preferred_element_type=jnp.float32)
    o_ref[...] = y.astype(o_ref.dtype)


def causal_attention(q, k, v):
    """q, k, v: (B*H, T, hd) -> (B*H, T, hd)."""
    BH, T, hd = q.shape
    scale = 1.0 / math.sqrt(hd)
    spec = pl.BlockSpec((None, T, hd), lambda i: (i, 0, 0))
    return pl.pallas_call(
        functools.partial(_attention_kernel, scale=scale),
        out_shape=jax.ShapeDtypeStruct((BH, T, hd), q.dtype),
        grid=(BH,),
        in_specs=[spec, spec, spec],
        out_specs=spec,
        compiler_params=pltpu.CompilerParams(
            dimension_semantics=("parallel",),
            vmem_limit_bytes=_vmem_limit_bytes(),
        ),
    )(q, k, v)


# --------------------------------------------------------------------------
# Transformer forward (Pallas kernels glued with a little plain JAX)
# --------------------------------------------------------------------------

def transformer_forward(params, idx, config):
    B, T = idx.shape
    C = config.n_embd
    H = config.n_head
    hd = C // H

    # TODO(synk): embedding gathers (token / position lookup) stay in XLA.
    tok = jnp.take(params["wte"], idx, axis=0)           # (B, T, C)
    pos = params["wpe"][:T]
    x = tok + pos[None, :, :]
    # dropout(p=config.dropout) -> identity at inference (p = 0.0)

    for blk in params["blocks"]:
        # --- attention sub-block ---
        h = layer_norm(x, blk["ln1_w"], blk["ln1_b"])
        qkv = linear(h.reshape(B * T, C), blk["qkv_w"], blk["qkv_b"])  # (B*T, 3C)
        qkv = qkv.reshape(B, T, 3, H, hd)
        q = qkv[:, :, 0].transpose(0, 2, 1, 3).reshape(B * H, T, hd)
        k = qkv[:, :, 1].transpose(0, 2, 1, 3).reshape(B * H, T, hd)
        v = qkv[:, :, 2].transpose(0, 2, 1, 3).reshape(B * H, T, hd)
        y = causal_attention(q, k, v)                                   # (B*H, T, hd)
        y = y.reshape(B, H, T, hd).transpose(0, 2, 1, 3).reshape(B * T, C)
        y = linear(y, blk["proj_w"], blk["proj_b"])
        x = x + y.reshape(B, T, C)

        # --- feed-forward sub-block ---
        h = layer_norm(x, blk["ln2_w"], blk["ln2_b"])
        f = linear(h.reshape(B * T, C), blk["fc_w"], blk["fc_b"], activation="gelu")
        f = linear(f, blk["fc2_w"], blk["fc2_b"])
        x = x + f.reshape(B, T, C)

    x = layer_norm(x, params["lnf_w"], params["lnf_b"])
    # tied lm_head (no bias)
    logits = linear(x.reshape(B * T, C), params["wte"].T, None)
    # TODO(synk): cross-entropy loss path (targets) not implemented; targets=None.
    return logits.reshape(B, T, -1)


# --------------------------------------------------------------------------
# Pure-JAX reference (same math, same GELU variant) for correctness check
# --------------------------------------------------------------------------

def reference_forward(params, idx, config):
    B, T = idx.shape
    C = config.n_embd
    H = config.n_head
    hd = C // H
    hp = jax.lax.Precision.HIGHEST

    def ln(x, w, b):
        m = jnp.mean(x, axis=-1, keepdims=True)
        var = jnp.mean((x - m) ** 2, axis=-1, keepdims=True)
        y = (x - m) * jax.lax.rsqrt(var + EPS) * w
        return y + b if b is not None else y

    tok = jnp.take(params["wte"], idx, axis=0)
    x = tok + params["wpe"][:T][None]
    for blk in params["blocks"]:
        h = ln(x, blk["ln1_w"], blk["ln1_b"])
        qkv = jnp.einsum("btc,cd->btd", h, blk["qkv_w"], precision=hp)
        if blk["qkv_b"] is not None:
            qkv = qkv + blk["qkv_b"]
        qkv = qkv.reshape(B, T, 3, H, hd)
        q = qkv[:, :, 0].transpose(0, 2, 1, 3)
        k = qkv[:, :, 1].transpose(0, 2, 1, 3)
        v = qkv[:, :, 2].transpose(0, 2, 1, 3)
        att = jnp.einsum("bhqd,bhkd->bhqk", q, k, precision=hp) / math.sqrt(hd)
        mask = jnp.tril(jnp.ones((T, T), bool))
        att = jnp.where(mask[None, None], att, -1e30)
        att = jax.nn.softmax(att, axis=-1)
        y = jnp.einsum("bhqk,bhkd->bhqd", att, v, precision=hp)
        y = y.transpose(0, 2, 1, 3).reshape(B, T, C)
        y = jnp.einsum("btc,cd->btd", y, blk["proj_w"], precision=hp)
        if blk["proj_b"] is not None:
            y = y + blk["proj_b"]
        x = x + y
        h = ln(x, blk["ln2_w"], blk["ln2_b"])
        f = jnp.einsum("btc,cd->btd", h, blk["fc_w"], precision=hp)
        if blk["fc_b"] is not None:
            f = f + blk["fc_b"]
        f = jax.nn.gelu(f, approximate=True)
        f = jnp.einsum("btc,cd->btd", f, blk["fc2_w"], precision=hp)
        if blk["fc2_b"] is not None:
            f = f + blk["fc2_b"]
        x = x + f
    x = ln(x, params["lnf_w"], params["lnf_b"])
    return jnp.einsum("btc,cv->btv", x, params["wte"].T, precision=hp)


# --------------------------------------------------------------------------
# Parameter init (matches Transformer._init_weights) and demo
# --------------------------------------------------------------------------

def init_params(key, config, vocab_size):
    C = config.n_embd
    keys = iter(jax.random.split(key, 2 + 4 * config.n_layer))

    def normal(k, shape):
        return 0.02 * jax.random.normal(k, shape, jnp.float32)

    def zeros(shape):
        return jnp.zeros(shape, jnp.float32) if config.bias else None

    params = {
        "wte": normal(next(keys), (vocab_size, C)),
        "wpe": normal(next(keys), (config.block_size, C)),
        "lnf_w": jnp.ones((C,), jnp.float32),
        "lnf_b": zeros((C,)),
        "blocks": [],
    }
    for _ in range(config.n_layer):
        params["blocks"].append({
            "ln1_w": jnp.ones((C,), jnp.float32), "ln1_b": zeros((C,)),
            "qkv_w": normal(next(keys), (C, 3 * C)), "qkv_b": zeros((3 * C,)),
            "proj_w": normal(next(keys), (C, C)), "proj_b": zeros((C,)),
            "ln2_w": jnp.ones((C,), jnp.float32), "ln2_b": zeros((C,)),
            "fc_w": normal(next(keys), (C, 4 * C)), "fc_b": zeros((4 * C,)),
            "fc2_w": normal(next(keys), (4 * C, C)), "fc2_b": zeros((C,)),
        })
    return params


if __name__ == "__main__":
    class Config:
        n_embd = 128        # lane-dense (multiple of 128) per perf feedback
        n_head = 4
        n_layer = 2
        block_size = 8
        bias = True
        dropout = 0.0

    config = Config()
    vocab_size = 256
    batch, T = 2, config.block_size

    key = jax.random.PRNGKey(0)
    pkey, ikey = jax.random.split(key)
    params = init_params(pkey, config, vocab_size)
    idx = jax.random.randint(ikey, (batch, T), 0, vocab_size, dtype=jnp.int32)

    logits = transformer_forward(params, idx, config)
    logits = jax.block_until_ready(logits)

    ref = jax.block_until_ready(reference_forward(params, idx, config))

    assert logits.shape == (batch, T, vocab_size)
    max_diff = jnp.max(jnp.abs(logits - ref))
    assert jnp.allclose(logits, ref, atol=1e-3, rtol=1e-3), \
        f"mismatch vs reference, max abs diff {max_diff}"

    print("KERNEL_OK")
</pallas_src>

<mosaic_0001>
module attributes {stable_mosaic.version = 11 : i64} {
  func.func @_layernorm_bias_kernel(%arg0: i32, %arg1: memref<16x128xf32, #tpu.memory_space<vmem>>, %arg2: memref<1x128xf32, #tpu.memory_space<vmem>>, %arg3: memref<1x128xf32, #tpu.memory_space<vmem>>, %arg4: memref<16x128xf32, #tpu.memory_space<vmem>>) attributes {dimension_semantics = [#tpu.dimension_semantics<parallel>], iteration_bounds = array<i64: 1>, scalar_prefetch = 0 : i64, scratch_operands = 0 : i64, tpu.core_type = #tpu.core_type<tc>, window_params = [{transform_indices = @transform_0, window_bounds = array<i64: 16, 128>}, {pipeline_mode = #tpu.pipeline_mode<synchronous>, transform_indices = @transform_1, window_bounds = array<i64: 1, 128>}, {pipeline_mode = #tpu.pipeline_mode<synchronous>, transform_indices = @transform_2, window_bounds = array<i64: 1, 128>}, {transform_indices = @transform_3, window_bounds = array<i64: 16, 128>}]} {
    %c0 = arith.constant 0 : index
    %c0_0 = arith.constant 0 : index
    %0 = vector.load %arg1[%c0, %c0_0] : memref<16x128xf32, #tpu.memory_space<vmem>>, vector<16x128xf32>
    %cst = arith.constant dense<0.000000e+00> : vector<16xf32>
    %1 = vector.multi_reduction <add>, %0, %cst [1] : vector<16x128xf32> to vector<16xf32>
    %2 = vector.shape_cast %1 : vector<16xf32> to vector<16x1xf32>
    %3 = arith.mulf %0, %0 : vector<16x128xf32>
    %cst_1 = arith.constant dense<0.000000e+00> : vector<16xf32>
    %4 = vector.multi_reduction <add>, %3, %cst_1 [1] : vector<16x128xf32> to vector<16xf32>
    %5 = vector.shape_cast %4 : vector<16xf32> to vector<16x1xf32>
    %cst_2 = arith.constant 1.280000e+02 : f32
    %6 = vector.broadcast %cst_2 : f32 to vector<16x1xf32>
    %7 = arith.divf %2, %6 : vector<16x1xf32>
    %cst_3 = arith.constant 1.280000e+02 : f32
    %8 = vector.broadcast %cst_3 : f32 to vector<16x1xf32>
    %9 = arith.divf %5, %8 : vector<16x1xf32>
    %10 = arith.mulf %7, %7 : vector<16x1xf32>
    %11 = arith.subf %9, %10 : vector<16x1xf32>
    %cst_4 = arith.constant 9.99999974E-6 : f32
    %12 = vector.broadcast %cst_4 : f32 to vector<16x1xf32>
    %13 = arith.addf %11, %12 : vector<16x1xf32>
    %14 = math.rsqrt %13 : vector<16x1xf32>
    %15 = vector.broadcast %7 : vector<16x1xf32> to vector<16x128xf32>
    %16 = arith.subf %0, %15 : vector<16x128xf32>
    %17 = vector.broadcast %14 : vector<16x1xf32> to vector<16x128xf32>
    %18 = arith.mulf %16, %17 : vector<16x128xf32>
    %c0_5 = arith.constant 0 : index
    %c0_6 = arith.constant 0 : index
    %19 = vector.load %arg2[%c0_5, %c0_6] : memref<1x128xf32, #tpu.memory_space<vmem>>, vector<1x128xf32>
    %20 = vector.broadcast %19 : vector<1x128xf32> to vector<16x128xf32>
    %21 = arith.mulf %18, %20 : vector<16x128xf32>
    %c0_7 = arith.constant 0 : index
    %c0_8 = arith.constant 0 : index
    %22 = vector.load %arg3[%c0_7, %c0_8] : memref<1x128xf32, #tpu.memory_space<vmem>>, vector<1x128xf32>
    %23 = vector.broadcast %22 : vector<1x128xf32> to vector<16x128xf32>
    %24 = arith.addf %21, %23 : vector<16x128xf32>
    %c0_9 = arith.constant 0 : index
    %c0_10 = arith.constant 0 : index
    %25 = vector.load %arg4[%c0_9, %c0_10] : memref<16x128xf32, #tpu.memory_space<vmem>>, vector<16x128xf32>
    tpu.vector_store %arg4[%c0_9, %c0_10], %24 {strides = array<i32>} : memref<16x128xf32, #tpu.memory_space<vmem>>, vector<16x128xf32>,
    return
  }
  func.func @transform_0(%arg0: i32) -> (i32, i32) {
    %c0_i32 = arith.constant 0 : i32
    %c0_i32_0 = arith.constant 0 : i32
    return %arg0, %c0_i32 : i32, i32
  }
  func.func @transform_1(%arg0: i32) -> (i32, i32) {
    %c0_i32 = arith.constant 0 : i32
    %c0_i32_0 = arith.constant 0 : i32
    %c0_i32_1 = arith.constant 0 : i32
    return %c0_i32, %c0_i32_0 : i32, i32
  }
  func.func @transform_2(%arg0: i32) -> (i32, i32) {
    %c0_i32 = arith.constant 0 : i32
    %c0_i32_0 = arith.constant 0 : i32
    %c0_i32_1 = arith.constant 0 : i32
    return %c0_i32, %c0_i32_0 : i32, i32
  }
  func.func @transform_3(%arg0: i32) -> (i32, i32) {
    %c0_i32 = arith.constant 0 : i32
    %c0_i32_0 = arith.constant 0 : i32
    return %arg0, %c0_i32 : i32, i32
  }
}

</mosaic_0001>

<bundles_post_ra>
// kernel: tpu_custom_call.1
= control target key start
LH: loop header
LB: loop body
LE: loop exit
PB: predicated region body
PF: predicated region fallthrough
CT: control target
= control target key end

     0   :  { %8 = vsyncpa [#allocation3], 0  ;;  %s213_s0 = inlined_call_operand.hbm [shape: f32[16,128], index: 0, kind: input, shape index: {}]   ;;  %s214_s1 = inlined_call_operand.vmem [shape: f32[1,128], index: 1, kind: input, shape index: {}]   ;;  %s215_s2 = inlined_call_operand.vmem [shape: f32[1,128], index: 2, kind: input, shape index: {}]   ;;  %s216_s3 = inlined_call_operand.hbm [shape: f32[16,128], index: 3, kind: output, shape index: {}]  }
   0x1   :  { %9 = vsyncpa [#allocation4], 0  ;;  %s153_s12 = smov [#allocation2]   ;;  %s105_s16 = scalar_lea.hbm %s213_s0, 256 }
   0x2   :  { %s15_s13 = sshll.u32 %s153_s12, 4  ;;  %p106_p0 = scmp.ne.s32.totalorder %s213_s0, %s105_s16  ;;  %s16_s13 = int_to_ptr.vmem [resolvable:$true] %s15_s13 }
   0x3   :  { %p109_p1 = scmp.lt.u32.totalorder %s105_s16, %s213_s0 }
   0x5   :  { %p111_p2 = pnand %p109_p1, %p106_p0 }
   0x7   :  { %114 = shalt.err (!%p111_p2)
}
   0x8   :  { %s115_s21 = scalar_lea.vmem %s16_s13, 256  ;;  %p120_p4 = scmp.lt.s32.totalorder %s16_s13, %s16_s13 }
   0x9   :  { %p116_p3 = scmp.ne.s32.totalorder %s16_s13, %s115_s21  ;;  %p121_p5 = scmp.lt.s32.totalorder %s115_s21, %s115_s21 }
   0xb   :  { %p122_p6 = por %p121_p5, %p120_p4 }
   0xd   :  { %p123_p7 = pnand %p122_p6, %p116_p3 }
   0xf   :  { %126 = shalt.err (!%p123_p7)
}
  0x10   :  { %s154_s22 = smov 128   ;;  %s155_s23 = smov 8  }
  0x11   :  { %21 = dma.hbm_to_vmem [thread:$0]  %s213_s0, 256, %s16_s13, [#allocation3], %s154_s22, %s154_s22, %s155_s23  }
  0x12   :  { %149 = dma.done.wait [#allocation3], 256  }
  0x13   :  { %150 = vsyncadd [#allocation3], 4294967040  ;;  %v29_v0 = vld [vmem:[#allocation2] sm:$0xff]  ;;  %v30_v1 = vld [vmem:[#allocation2 + $0x8] sm:$0xff]  ;;  %s156_s29 = smov [#allocation5]  }
  0x14   :  { %31 = vadd.xlane.f32.xlu0 %v29_v0  ;;  %v35_v2 = vmul.f32 %v29_v0, %v29_v0  ;;  %v36_v3 = vmul.f32 %v30_v1, %v30_v1  ;;  %v95_v20 = vld [vmem:[%s214_s1] ss:$0 sm:$0xff]  ;;  %s83_s30 = sshll.u32 %s156_s29, 4  ;;  %s84_s30 = int_to_ptr.vmem [resolvable:$true] %s83_s30 }
  0x15   :  { %v96_v22 = vld [vmem:[%s215_s2] ss:$0 sm:$0xff]  ;;  %s127_s4 = scalar_lea.vmem %s84_s30, 256  ;;  %p132_p9 = scmp.lt.s32.totalorder %s84_s30, %s84_s30 }
  0x16   :  { %37 = vadd.xlane.f32.xlu1 %v35_v2  ;;  %p128_p8 = scmp.ne.s32.totalorder %s84_s30, %s127_s4  ;;  %p133_p10 = scmp.lt.s32.totalorder %s127_s4, %s127_s4 }
  0x18   :  { %33 = vadd.xlane.f32.xlu0 %v30_v1  ;;  %p134_p11 = por %p133_p10, %p132_p9 }
  0x1a   :  { %39 = vadd.xlane.f32.xlu1 %v36_v3  ;;  %p135_p12 = pnand %p134_p11, %p128_p8 }
  0xa1   :  { %v32_v4 = vpop.xlane.xlu0 %31 }
  0xa2   :  { %v42_v5 = vmul.f32 0.0078125, %v32_v4 }
  0xa3   :  { %v38_v6 = vpop.xlane.xlu1 %37 }
  0xa4   :  { %v46_v7 = vmul.f32 %v42_v5, %v42_v5  ;;  %v44_v8 = vmul.f32 0.0078125, %v38_v6  ;;  %v54_v18 = vsub.f32 %v29_v0, %v42_v5 }
  0xa5   :  { %v34_v9 = vpop.xlane.xlu0 %33 }
  0xa6   :  { %v48_v10 = vsub.f32 %v44_v8, %v46_v7  ;;  %v43_v11 = vmul.f32 0.0078125, %v34_v9 }
  0xa7   :  { %v40_v12 = vpop.xlane.xlu1 %39 }
  0xa8   :  { %v50_v13 = vadd.f32 1e-05, %v48_v10  ;;  %v47_v14 = vmul.f32 %v43_v11, %v43_v11  ;;  %v45_v15 = vmul.f32 0.0078125, %v40_v12  ;;  %v55_v23 = vsub.f32 %v30_v1, %v43_v11 }
  0xaa   :  { %101 = vrsqrt.f32 %v50_v13  ;;  %v49_v16 = vsub.f32 %v45_v15, %v47_v14 }
  0xac   :  { %v51_v17 = vadd.f32 1e-05, %v49_v16 }
  0xae   :  { %103 = vrsqrt.f32 %v51_v17 }
  0xb4   :  { %v102_v19 = vpop.eup %101 }
  0xb5   :  { %v56_v21 = vmul.f32 %v102_v19, %v54_v18 }
  0xb7   :  { %v65_v24 = vmul.f32 %v95_v20, %v56_v21 }
  0xb8   :  { %v104_v25 = vpop.eup %103 }
  0xb9   :  { %v57_v26 = vmul.f32 %v104_v25, %v55_v23  ;;  %v74_v27 = vadd.f32 %v96_v22, %v65_v24 }
  0xbb   :  { %v66_v28 = vmul.f32 %v95_v20, %v57_v26  ;;  %76 = vst [vmem:[#allocation5] sm:$0xff] %v74_v27 }
  0xbd   :  { %v75_v29 = vadd.f32 %v96_v22, %v66_v28 }
  0xbf   :  { %77 = vst [vmem:[#allocation5 + $0x8] sm:$0xff] %v75_v29 }
  0xc0   :  { %138 = shalt.err (!%p135_p12)
}
  0xc1   :  { %s139_s5 = scalar_lea.hbm %s216_s3, 256 }
  0xc2   :  { %p140_p13 = scmp.ne.s32.totalorder %s216_s3, %s139_s5  ;;  %p143_p0 = scmp.lt.u32.totalorder %s139_s5, %s216_s3 }
  0xc4   :  { %p145_p1 = pnand %p143_p0, %p140_p13 }
  0xc6   :  { %148 = shalt.err (!%p145_p1)
}
  0xc7   :  { %89 = dma.vmem_to_hbm [thread:$0]  %s84_s30, 256, %s216_s3, [#allocation4], %s154_s22, %s154_s22, %s155_s23  }
  0xc8   :  { %151 = dma.done.wait [#allocation4], 256  }
  0xc9   :  { %152 = vsyncadd [#allocation4], 4294967040 }
  0xca   :  { %93 = vsyncpa [#allocation3], 1 }
  0xcb   :  { %94 = vsyncpa [#allocation4], 1 }

</bundles_post_ra>
